<compile_context>
chip_gen: v7x
topology: tpu7x:2x2x1
jax: 0.10.0
libtpu: 0.0.40
codegen_flags: <defaults>
</compile_context>

<pallas_src>
import functools

import jax
import jax.numpy as jnp
from jax.experimental import pallas as pl
from jax.experimental.pallas import tpu as pltpu

EPS = 1e-6            # Norm.eps in the reference module
_LANES = 128
_BLOCK_BYTES = 2 << 20  # ~2 MiB per streamed input block (see header comment)
_MIN_TILE = 256         # below this the ~0.35us per-grid-step overhead dominates
_MIN_GRID = 4           # aim for >= 4 grid steps when there is enough work


def _round_up(x, m):
    return (x + m - 1) // m * m


def _choose_row_tile(rows, bytes_per_row):
    """Byte-budgeted row tile; multiple of 16 unless it equals the full row count."""
    budget = max(16, (_BLOCK_BYTES // max(bytes_per_row, 1)) // 16 * 16)
    split = _round_up(-(-rows // _MIN_GRID), 16)      # ~rows/4, for megacore overlap
    tile = min(budget, max(_MIN_TILE, split))
    if tile >= rows:
        return rows                                   # single block == full array dim
    return tile


def _seg_sums(v, seg_bf16):
    # Segmented (per lane-group) sums on the otherwise-idle MXU.  The MXU input
    # path is bf16, so split the f32 operand into hi/lo bf16 parts (error ~2^-18);
    # seg is exactly representable (0/1) in bf16.
    hi = v.astype(jnp.bfloat16)
    lo = (v - hi.astype(jnp.float32)).astype(jnp.bfloat16)
    return (jnp.dot(hi, seg_bf16, preferred_element_type=jnp.float32)
            + jnp.dot(lo, seg_bf16, preferred_element_type=jnp.float32))


def _norm_kernel_packed(x_ref, seg_ref, alpha_ref, bias_ref, o_ref, *, d):
    # x_ref: (row_tile, 128); each 128-lane vector row holds 128//d logical rows
    # of the (R, d) input, so loads and stores are fully lane-dense.
    x = x_ref[...].astype(jnp.float32)
    seg = seg_ref[...]                               # (128,128) block-diag 0/1 (bf16)
    s = _seg_sums(x, seg)                            # per-group sum(x), bcast in-group
    sq = _seg_sums(x * x, seg)                       # per-group sum(x^2): single pass
    mean = s * (1.0 / d)
    # unbiased variance; clamp tiny negative fp noise before sqrt
    var = jnp.maximum((sq - s * mean) * (1.0 / (d - 1)), 0.0)
    # Exact 1/(std+eps): matches reference even when var==0 (constant rows) and
    # avoids the ~3e-3 relative error of the approximate hardware reciprocal.
    inv = 1.0 / (jnp.sqrt(var) + EPS)
    out = (x - mean) * (alpha_ref[...] * inv) + bias_ref[...]
    o_ref[...] = out.astype(o_ref.dtype)


def _norm_kernel_plain(x_ref, alpha_ref, bias_ref, o_ref):
    # x_ref: (row_tile, D) with D the full feature dim (lane-dense if D % 128 == 0).
    x = x_ref[...].astype(jnp.float32)
    d = x.shape[-1]
    s = jnp.sum(x, axis=-1, keepdims=True)           # two independent XLU reductions
    sq = jnp.sum(x * x, axis=-1, keepdims=True)
    mean = s * (1.0 / d)
    var = jnp.maximum((sq - s * mean) * (1.0 / (d - 1)), 0.0)
    inv = 1.0 / (jnp.sqrt(var) + EPS)
    out = (x - mean) * (alpha_ref[...] * inv) + bias_ref[...]
    o_ref[...] = out.astype(o_ref.dtype)


def _run_norm_packed(x2d, alpha, bias, out_dtype):
    R, D = x2d.shape
    P = _LANES // D                                  # logical rows per 128-lane vector
    rp = R // P                                      # caller guarantees R % P == 0
    xp = x2d.reshape(rp, _LANES)                     # free row-major re-view, no copy

    row_tile = _choose_row_tile(rp, _LANES * x2d.dtype.itemsize)
    grid = -(-rp // row_tile)                        # last block may overhang (masked)

    lane = jnp.arange(_LANES)
    seg = (lane[:, None] // D == lane[None, :] // D).astype(jnp.bfloat16)
    alpha_p = jnp.tile(alpha.reshape(1, D).astype(jnp.float32), (1, P))
    bias_p = jnp.tile(bias.reshape(1, D).astype(jnp.float32), (1, P))

    out = pl.pallas_call(
        functools.partial(_norm_kernel_packed, d=D),
        out_shape=jax.ShapeDtypeStruct((rp, _LANES), out_dtype),
        grid_spec=pltpu.PrefetchScalarGridSpec(
            num_scalar_prefetch=0,
            grid=(grid,),
            in_specs=[
                pl.BlockSpec((row_tile, _LANES), lambda i: (i, 0)),
                pl.BlockSpec((_LANES, _LANES), lambda i: (0, 0)),   # resident
                pl.BlockSpec((1, _LANES), lambda i: (0, 0)),        # resident
                pl.BlockSpec((1, _LANES), lambda i: (0, 0)),        # resident
            ],
            out_specs=pl.BlockSpec((row_tile, _LANES), lambda i: (i, 0)),
        ),
        compiler_params=pltpu.CompilerParams(
            dimension_semantics=("parallel",)),
    )(xp, seg, alpha_p, bias_p)
    return out.reshape(R, D)


def _run_norm_plain(x2d, alpha, bias, out_dtype):
    R, D = x2d.shape
    row_tile = _choose_row_tile(R, D * x2d.dtype.itemsize)
    grid = -(-R // row_tile)                         # last block may overhang (masked)
    alpha2d = alpha.reshape(1, D).astype(jnp.float32)
    bias2d = bias.reshape(1, D).astype(jnp.float32)

    out = pl.pallas_call(
        _norm_kernel_plain,
        out_shape=jax.ShapeDtypeStruct((R, D), out_dtype),
        grid_spec=pltpu.PrefetchScalarGridSpec(
            num_scalar_prefetch=0,
            grid=(grid,),
            in_specs=[
                pl.BlockSpec((row_tile, D), lambda i: (i, 0)),
                pl.BlockSpec((1, D), lambda i: (0, 0)),             # resident
                pl.BlockSpec((1, D), lambda i: (0, 0)),             # resident
            ],
            out_specs=pl.BlockSpec((row_tile, D), lambda i: (i, 0)),
        ),
        compiler_params=pltpu.CompilerParams(
            dimension_semantics=("parallel",)),
    )(x2d, alpha2d, bias2d)
    return out


def decoder_forward(trg, e_outputs, src_mask, trg_mask, alpha, bias):
    """Pallas implementation of Decoder.forward.

    Only Norm(trg) contributes to the output (see reference-semantics note at the
    top); e_outputs / masks are accepted for signature parity.
    """
    del e_outputs, src_mask, trg_mask  # dead in the reference forward
    B, S, D = trg.shape
    R = B * S
    x2d = trg.reshape(R, D)
    if D < _LANES and _LANES % D == 0 and R % (_LANES // D) == 0:
        out2d = _run_norm_packed(x2d, alpha, bias, trg.dtype)
    else:
        out2d = _run_norm_plain(x2d, alpha, bias, trg.dtype)
    return out2d.reshape(B, S, D)


def _norm_ref(x, alpha, bias):
    x = x.astype(jnp.float32)
    d = x.shape[-1]
    mean = jnp.mean(x, axis=-1, keepdims=True)
    std = jnp.sqrt(jnp.sum((x - mean) ** 2, axis=-1, keepdims=True) / (d - 1))
    return alpha * (x - mean) / (std + EPS) + bias


def _check(out, ref, label):
    err = float(jnp.max(jnp.abs(out.astype(jnp.float32) - ref)))
    assert jnp.allclose(out.astype(jnp.float32), ref, atol=1e-3, rtol=1e-3), (label, err)


if __name__ == "__main__":
    key = jax.random.PRNGKey(0)
    k1, k2, k3, k4, k5 = jax.random.split(key, 5)

    # Case 1: module-sized toy config (d_model=32) -> lane-packed path, single block.
    B, S, D = 2, 8, 32
    trg = jax.random.normal(k1, (B, S, D), dtype=jnp.float32)
    e_outputs = jax.random.normal(k2, (B, S, D), dtype=jnp.float32)
    src_mask = jnp.ones((B, 1, S), dtype=jnp.float32)
    trg_mask = jnp.broadcast_to(jnp.tril(jnp.ones((S, S), jnp.float32)), (B, S, S))
    alpha = jnp.ones((D,), dtype=jnp.float32)   # Norm.__init__: alpha = ones
    bias = jnp.zeros((D,), dtype=jnp.float32)   # Norm.__init__: bias  = zeros

    out = decoder_forward(trg, e_outputs, src_mask, trg_mask, alpha, bias)
    out = jax.block_until_ready(out)
    assert out.shape == trg.shape and out.dtype == trg.dtype
    _check(out, _norm_ref(trg, alpha, bias), "case1")

    # Case 2: lane-dense d_model (128), ragged row count, single block -> plain path.
    B2, S2, D2 = 3, 7, 128
    trg2 = jax.random.normal(k3, (B2, S2, D2), dtype=jnp.float32)
    alpha2 = jnp.ones((D2,), dtype=jnp.float32)
    bias2 = jnp.zeros((D2,), dtype=jnp.float32)
    out2 = jax.block_until_ready(decoder_forward(trg2, trg2, None, None, alpha2, bias2))
    _check(out2, _norm_ref(trg2, alpha2, bias2), "case2")

    # Case 3: packed path with a multi-step, non-dividing grid (ragged last block).
    B3, S3, D3 = 6, 200, 32
    trg3 = jax.random.normal(k4, (B3, S3, D3), dtype=jnp.float32)
    alpha3 = jnp.ones((D3,), dtype=jnp.float32)
    bias3 = jnp.zeros((D3,), dtype=jnp.float32)
    out3 = jax.block_until_ready(decoder_forward(trg3, trg3, None, None, alpha3, bias3))
    _check(out3, _norm_ref(trg3, alpha3, bias3), "case3")

    # Case 4: plain path with a multi-step, non-dividing grid (ragged last block).
    B4, S4, D4 = 25, 120, 128
    trg4 = jax.random.normal(k5, (B4, S4, D4), dtype=jnp.float32)
    alpha4 = jnp.ones((D4,), dtype=jnp.float32)
    bias4 = jnp.zeros((D4,), dtype=jnp.float32)
    out4 = jax.block_until_ready(decoder_forward(trg4, trg4, None, None, alpha4, bias4))
    _check(out4, _norm_ref(trg4, alpha4, bias4), "case4")

    print("KERNEL_OK")
</pallas_src>

<mosaic_0001>
module attributes {stable_mosaic.version = 11 : i64} {
  func.func @_norm_kernel_packed(%arg0: i32, %arg1: memref<4x128xf32, #tpu.memory_space<vmem>>, %arg2: memref<128x128xbf16, #tpu.memory_space<vmem>>, %arg3: memref<1x128xf32, #tpu.memory_space<vmem>>, %arg4: memref<1x128xf32, #tpu.memory_space<vmem>>, %arg5: memref<4x128xf32, #tpu.memory_space<vmem>>) attributes {dimension_semantics = [#tpu.dimension_semantics<parallel>], iteration_bounds = array<i64: 1>, scalar_prefetch = 0 : i64, scratch_operands = 0 : i64, tpu.core_type = #tpu.core_type<tc>, window_params = [{transform_indices = @transform_0, window_bounds = array<i64: 4, 128>}, {pipeline_mode = #tpu.pipeline_mode<synchronous>, transform_indices = @transform_1, window_bounds = array<i64: 128, 128>}, {pipeline_mode = #tpu.pipeline_mode<synchronous>, transform_indices = @transform_2, window_bounds = array<i64: 1, 128>}, {pipeline_mode = #tpu.pipeline_mode<synchronous>, transform_indices = @transform_3, window_bounds = array<i64: 1, 128>}, {transform_indices = @transform_4, window_bounds = array<i64: 4, 128>}]} {
    %c0 = arith.constant 0 : index
    %c0_0 = arith.constant 0 : index
    %0 = vector.load %arg1[%c0, %c0_0] : memref<4x128xf32, #tpu.memory_space<vmem>>, vector<4x128xf32>
    %c0_1 = arith.constant 0 : index
    %c0_2 = arith.constant 0 : index
    %1 = vector.load %arg2[%c0_1, %c0_2] : memref<128x128xbf16, #tpu.memory_space<vmem>>, vector<128x128xbf16>
    %2 = arith.truncf %0 : vector<4x128xf32> to vector<4x128xbf16>
    %3 = arith.extf %2 : vector<4x128xbf16> to vector<4x128xf32>
    %4 = arith.subf %0, %3 : vector<4x128xf32>
    %5 = arith.truncf %4 : vector<4x128xf32> to vector<4x128xbf16>
    %cst = arith.constant dense<0.000000e+00> : vector<4x128xf32>
    %6 = tpu.matmul %2, %1, %cst {dimension_numbers = #tpu.dot_dimension_numbers<[1], [0], [0], [1], [0, 0, 1, 1], [], []>} : vector<4x128xbf16>, vector<128x128xbf16>, vector<4x128xf32> -> vector<4x128xf32>
    %cst_3 = arith.constant dense<0.000000e+00> : vector<4x128xf32>
    %7 = tpu.matmul %5, %1, %cst_3 {dimension_numbers = #tpu.dot_dimension_numbers<[1], [0], [0], [1], [0, 0, 1, 1], [], []>} : vector<4x128xbf16>, vector<128x128xbf16>, vector<4x128xf32> -> vector<4x128xf32>
    %8 = arith.addf %6, %7 : vector<4x128xf32>
    %9 = arith.mulf %0, %0 : vector<4x128xf32>
    %10 = arith.truncf %9 : vector<4x128xf32> to vector<4x128xbf16>
    %11 = arith.extf %10 : vector<4x128xbf16> to vector<4x128xf32>
    %12 = arith.subf %9, %11 : vector<4x128xf32>
    %13 = arith.truncf %12 : vector<4x128xf32> to vector<4x128xbf16>
    %cst_4 = arith.constant dense<0.000000e+00> : vector<4x128xf32>
    %14 = tpu.matmul %10, %1, %cst_4 {dimension_numbers = #tpu.dot_dimension_numbers<[1], [0], [0], [1], [0, 0, 1, 1], [], []>} : vector<4x128xbf16>, vector<128x128xbf16>, vector<4x128xf32> -> vector<4x128xf32>
    %cst_5 = arith.constant dense<0.000000e+00> : vector<4x128xf32>
    %15 = tpu.matmul %13, %1, %cst_5 {dimension_numbers = #tpu.dot_dimension_numbers<[1], [0], [0], [1], [0, 0, 1, 1], [], []>} : vector<4x128xbf16>, vector<128x128xbf16>, vector<4x128xf32> -> vector<4x128xf32>
    %16 = arith.addf %14, %15 : vector<4x128xf32>
    %cst_6 = arith.constant 3.125000e-02 : f32
    %17 = vector.broadcast %cst_6 : f32 to vector<4x128xf32>
    %18 = arith.mulf %8, %17 : vector<4x128xf32>
    %19 = arith.mulf %8, %18 : vector<4x128xf32>
    %20 = arith.subf %16, %19 : vector<4x128xf32>
    %cst_7 = arith.constant 0.0322580636 : f32
    %21 = vector.broadcast %cst_7 : f32 to vector<4x128xf32>
    %22 = arith.mulf %20, %21 : vector<4x128xf32>
    %cst_8 = arith.constant 0.000000e+00 : f32
    %23 = vector.broadcast %cst_8 : f32 to vector<4x128xf32>
    %24 = arith.maximumf %22, %23 : vector<4x128xf32>
    %25 = math.sqrt %24 : vector<4x128xf32>
    %cst_9 = arith.constant 9.99999997E-7 : f32
    %26 = vector.broadcast %cst_9 : f32 to vector<4x128xf32>
    %27 = arith.addf %25, %26 : vector<4x128xf32>
    %cst_10 = arith.constant 1.000000e+00 : f32
    %28 = vector.broadcast %cst_10 : f32 to vector<4x128xf32>
    %29 = arith.divf %28, %27 : vector<4x128xf32>
    %30 = arith.subf %0, %18 : vector<4x128xf32>
    %c0_11 = arith.constant 0 : index
    %c0_12 = arith.constant 0 : index
    %31 = vector.load %arg3[%c0_11, %c0_12] : memref<1x128xf32, #tpu.memory_space<vmem>>, vector<1x128xf32>
    %32 = vector.broadcast %31 : vector<1x128xf32> to vector<4x128xf32>
    %33 = arith.mulf %32, %29 : vector<4x128xf32>
    %34 = arith.mulf %30, %33 : vector<4x128xf32>
    %c0_13 = arith.constant 0 : index
    %c0_14 = arith.constant 0 : index
    %35 = vector.load %arg4[%c0_13, %c0_14] : memref<1x128xf32, #tpu.memory_space<vmem>>, vector<1x128xf32>
    %36 = vector.broadcast %35 : vector<1x128xf32> to vector<4x128xf32>
    %37 = arith.addf %34, %36 : vector<4x128xf32>
    %c0_15 = arith.constant 0 : index
    %c0_16 = arith.constant 0 : index
    %38 = vector.load %arg5[%c0_15, %c0_16] : memref<4x128xf32, #tpu.memory_space<vmem>>, vector<4x128xf32>
    tpu.vector_store %arg5[%c0_15, %c0_16], %37 {strides = array<i32>} : memref<4x128xf32, #tpu.memory_space<vmem>>, vector<4x128xf32>,
    return
  }
  func.func @transform_0(%arg0: i32) -> (i32, i32) {
    %c0_i32 = arith.constant 0 : i32
    %c0_i32_0 = arith.constant 0 : i32
    return %arg0, %c0_i32 : i32, i32
  }
  func.func @transform_1(%arg0: i32) -> (i32, i32) {
    %c0_i32 = arith.constant 0 : i32
    %c0_i32_0 = arith.constant 0 : i32
    %c0_i32_1 = arith.constant 0 : i32
    return %c0_i32, %c0_i32_0 : i32, i32
  }
  func.func @transform_2(%arg0: i32) -> (i32, i32) {
    %c0_i32 = arith.constant 0 : i32
    %c0_i32_0 = arith.constant 0 : i32
    %c0_i32_1 = arith.constant 0 : i32
    return %c0_i32, %c0_i32_0 : i32, i32
  }
  func.func @transform_3(%arg0: i32) -> (i32, i32) {
    %c0_i32 = arith.constant 0 : i32
    %c0_i32_0 = arith.constant 0 : i32
    %c0_i32_1 = arith.constant 0 : i32
    return %c0_i32, %c0_i32_0 : i32, i32
  }
  func.func @transform_4(%arg0: i32) -> (i32, i32) {
    %c0_i32 = arith.constant 0 : i32
    %c0_i32_0 = arith.constant 0 : i32
    return %arg0, %c0_i32 : i32, i32
  }
}

</mosaic_0001>

<bundles_post_ra>
// kernel: tpu_custom_call.1
= control target key start
LH: loop header
LB: loop body
LE: loop exit
PB: predicated region body
PF: predicated region fallthrough
CT: control target
= control target key end

     0   :  { %9 = vsyncpa [#allocation3], 0  ;;  %s683_s0 = inlined_call_operand.hbm [shape: f32[4,128], index: 0, kind: input, shape index: {}]   ;;  %s684_s1 = inlined_call_operand.hbm [shape: bf16[128,128], index: 1, kind: input, shape index: {}]   ;;  %s685_s2 = inlined_call_operand.vmem [shape: f32[1,128], index: 2, kind: input, shape index: {}]   ;;  %s686_s3 = inlined_call_operand.vmem [shape: f32[1,128], index: 3, kind: input, shape index: {}]   ;;  %s687_s4 = inlined_call_operand.hbm [shape: f32[4,128], index: 4, kind: output, shape index: {}]  }
   0x1   :  { %10 = vsyncpa [#allocation6], 0 }
   0x2   :  { %11 = vsyncpa [#allocation4], 0  ;;  %s554_s15 = smov [#allocation2]   ;;  %s555_s17 = smov [#allocation5]  }
   0x3   :  { %s18_s16 = sshll.u32 %s554_s15, 4  ;;  %s27_s18 = sshll.u32 %s555_s17, 4  ;;  %s19_s16 = int_to_ptr.vmem [resolvable:$true] %s18_s16  ;;  %s586_s18 = int_to_ptr.vmem [resolvable:$true] %s27_s18 }
   0x4   :  { %s482_s21 = scalar_lea.hbm %s683_s0, 64 }
   0x5   :  { %p483_p0 = scmp.ne.s32.totalorder %s683_s0, %s482_s21  ;;  %p486_p1 = scmp.lt.u32.totalorder %s482_s21, %s683_s0 }
   0x7   :  { %p488_p2 = pnand %p486_p1, %p483_p0 }
   0x9   :  { %491 = shalt.err (!%p488_p2)
}
   0xa   :  { %s492_s26 = scalar_lea.vmem %s19_s16, 64  ;;  %p497_p4 = scmp.lt.s32.totalorder %s19_s16, %s19_s16 }
   0xb   :  { %p493_p3 = scmp.ne.s32.totalorder %s19_s16, %s492_s26  ;;  %p498_p5 = scmp.lt.s32.totalorder %s492_s26, %s492_s26 }
   0xd   :  { %p499_p6 = por %p498_p5, %p497_p4 }
   0xf   :  { %p500_p7 = pnand %p499_p6, %p493_p3 }
  0x11   :  { %503 = shalt.err (!%p500_p7)
}
  0x12   :  { %21 = dma.hbm_to_vmem [thread:$0]  %s683_s0, 64, %s19_s16, [#allocation3]  }
  0x13   :  { %s504_s5 = scalar_lea.hbm %s684_s1, 1024 }
  0x14   :  { %p505_p8 = scmp.ne.s32.totalorder %s684_s1, %s504_s5  ;;  %p508_p9 = scmp.lt.u32.totalorder %s504_s5, %s684_s1 }
  0x16   :  { %p510_p10 = pnand %p508_p9, %p505_p8 }
  0x18   :  { %513 = shalt.err (!%p510_p10)
}
  0x19   :  { %s514_s10 = scalar_lea.vmem %s586_s18, 1024  ;;  %p519_p12 = scmp.lt.s32.totalorder %s586_s18, %s586_s18 }
  0x1a   :  { %p515_p11 = scmp.ne.s32.totalorder %s586_s18, %s514_s10  ;;  %p520_p13 = scmp.lt.s32.totalorder %s514_s10, %s514_s10 }
  0x1c   :  { %p521_p0 = por %p520_p13, %p519_p12 }
  0x1e   :  { %p522_p1 = pnand %p521_p0, %p515_p11 }
  0x20   :  { %525 = shalt.err (!%p522_p1)
}
  0x21   :  { %s556_s0 = smov 64   ;;  %s557_s11 = smov 4  }
  0x22   :  { %33 = dma.hbm_to_vmem [thread:$0]  %s684_s1, 1024, %s586_s18, [#allocation6], %s556_s0, %s556_s0, %s557_s11  }
  0x23   :  { %548 = dma.done.wait [#allocation3], 64  }
  0x24   :  { %549 = vsyncadd [#allocation3], 4294967232 }
  0x25   :  { %550 = dma.done.wait [#allocation6], 1024  }
  0x26   :  { %551 = vsyncadd [#allocation6], 4294966272  ;;  %v558_v0 = vmov 0.0   ;;  %vm559_vm0 = vmmov 0   ;;  %v470_v1 = vld [vmem:[#allocation5] sm:$0xff]   ;;  %v471_v2 = vld [vmem:[#allocation5 + $0x8] sm:$0xff]  }
  0x27   :  { %375 = vmatprep.subr.bf16.mxu0 %v558_v0  ;;  %415 = vmatprep.subr.bf16.mxu1 %v558_v0  ;;  %v472_v3 = vld [vmem:[#allocation5 + $0x10] sm:$0xff]   ;;  %v473_v4 = vld [vmem:[#allocation5 + $0x18] sm:$0xff]   ;;  %v474_v7 = vld [vmem:[#allocation5 + $0x20] sm:$0xff]   ;;  %s560_s17 = smov [#allocation7]  }
  0x28   :  { %391 = vmatprep.mubr.msk.bf16.mxu0 %vm559_vm0, %v558_v0  ;;  %431 = vmatprep.mubr.msk.bf16.mxu1 %vm559_vm0, %v558_v0  ;;  %v627_v5 = vld [vmem:[#allocation2] sm:$0xf]  ;;  %v475_v10 = vld [vmem:[#allocation5 + $0x28] sm:$0xff]   ;;  %v476_v13 = vld [vmem:[#allocation5 + $0x30] sm:$0xff]   ;;  %s319_s18 = sshll.u32 %s560_s17, 4  ;;  %s320_s18 = int_to_ptr.vmem [resolvable:$true] %s319_s18 }
  0x29   :  { %376 = vmatpush3.bf16.msra.mxu0 %v470_v1  ;;  %416 = vmatpush3.bf16.msra.mxu1 %v470_v1  ;;  %v194_v6 = vmul.f32 %v627_v5, %v627_v5  ;;  %v62_v8 = vpack.c.bf16 %v627_v5, %v627_v5  ;;  %v477_v16 = vld [vmem:[#allocation5 + $0x38] sm:$0xff]   ;;  %s526_s19 = scalar_lea.vmem %s320_s18, 64  ;;  %p531_p3 = scmp.lt.s32.totalorder %s320_s18, %s320_s18 }
  0x2a   :  { %377 = vmatprep.subr.bf16.mxu0 %v558_v0  ;;  %417 = vmatprep.subr.bf16.mxu1 %v558_v0  ;;  %v337_v38 = vld [vmem:[%s685_s2] ss:$0 sm:$0xff]  ;;  %p527_p2 = scmp.ne.s32.totalorder %s320_s18, %s526_s19  ;;  %p532_p4 = scmp.lt.s32.totalorder %s526_s19, %s526_s19 }
  0x2b   :  { %v195_v9 = vpack.c.bf16 %v194_v6, %v194_v6  ;;  %v63_v11 = vunpack.c.l.bf16 %v62_v8  ;;  %v338_v42 = vld [vmem:[%s686_s3] ss:$0 sm:$0xff] }
  0x2c   :  { %p533_p5 = por %p532_p4, %p531_p3 }
  0x2d   :  { %378 = vmatpush3.bf16.msra.mxu0 %v471_v2  ;;  %418 = vmatpush3.bf16.msra.mxu1 %v471_v2  ;;  %v196_v12 = vunpack.c.l.bf16 %v195_v9  ;;  %v64_v14 = vsub.f32 %v627_v5, %v63_v11 }
  0x2e   :  { %379 = vmatprep.subr.bf16.mxu0 %v558_v0  ;;  %419 = vmatprep.subr.bf16.mxu1 %v558_v0  ;;  %p534_p6 = pnand %p533_p5, %p527_p2 }
  0x2f   :  { %v197_v15 = vsub.f32 %v194_v6, %v196_v12  ;;  %v65_v17 = vpack.c.bf16 %v64_v14, %v64_v14 }
  0x31   :  { %380 = vmatpush3.bf16.msra.mxu0 %v472_v3  ;;  %420 = vmatpush3.bf16.msra.mxu1 %v472_v3  ;;  %v198_v18 = vpack.c.bf16 %v197_v15, %v197_v15 }
  0x32   :  { %381 = vmatprep.subr.bf16.mxu0 %v558_v0  ;;  %421 = vmatprep.subr.bf16.mxu1 %v558_v0 }
  0x35   :  { %382 = vmatpush3.bf16.msra.mxu0 %v473_v4  ;;  %422 = vmatpush3.bf16.msra.mxu1 %v473_v4 }
  0x36   :  { %383 = vmatprep.subr.bf16.mxu0 %v558_v0  ;;  %423 = vmatprep.subr.bf16.mxu1 %v558_v0 }
  0x39   :  { %384 = vmatpush3.bf16.msra.mxu0 %v474_v7  ;;  %424 = vmatpush3.bf16.msra.mxu1 %v474_v7 }
  0x3a   :  { %385 = vmatprep.subr.bf16.mxu0 %v558_v0  ;;  %425 = vmatprep.subr.bf16.mxu1 %v558_v0 }
  0x3d   :  { %386 = vmatpush3.bf16.msra.mxu0 %v475_v10  ;;  %426 = vmatpush3.bf16.msra.mxu1 %v475_v10 }
  0x3e   :  { %387 = vmatprep.subr.bf16.mxu0 %v558_v0  ;;  %427 = vmatprep.subr.bf16.mxu1 %v558_v0 }
  0x41   :  { %388 = vmatpush3.bf16.msra.mxu0 %v476_v13  ;;  %428 = vmatpush3.bf16.msra.mxu1 %v476_v13 }
  0x42   :  { %389 = vmatprep.subr.bf16.mxu0 %v558_v0  ;;  %429 = vmatprep.subr.bf16.mxu1 %v558_v0 }
  0x45   :  { %390 = vmatpush3.bf16.msra.mxu0 %v477_v16  ;;  %430 = vmatpush3.bf16.msra.mxu1 %v477_v16 }
  0x46   :  { %395 = vmatprep.subr.bf16.mxu0 %v558_v0  ;;  %435 = vmatprep.subr.bf16.mxu1 %v558_v0 }
  0x48   :  { %392 = vmatmul.mubr.bf16.vlgmr.msra.gmra.mrb[0].mxu0 %v65_v17  ;;  %432 = vmatmul.mubr.bf16.vlgmr.msra.gmra.mrb[0].mxu1 %v198_v18 }
  0x49   :  { %396 = vmatpush3.bf16.msra.mxu0 %v470_v1  ;;  %436 = vmatpush3.bf16.msra.mxu1 %v470_v1 }
  0x4a   :  { %397 = vmatprep.subr.bf16.mxu0 %v558_v0  ;;  %437 = vmatprep.subr.bf16.mxu1 %v558_v0 }
  0x4b   :  { %411 = vmatprep.mubr.msk.bf16.mxu0 %vm559_vm0, %v558_v0  ;;  %451 = vmatprep.mubr.msk.bf16.mxu1 %vm559_vm0, %v558_v0 }
  0x4d   :  { %398 = vmatpush3.bf16.msra.mxu0 %v471_v2  ;;  %438 = vmatpush3.bf16.msra.mxu1 %v471_v2 }
  0x4e   :  { %399 = vmatprep.subr.bf16.mxu0 %v558_v0  ;;  %439 = vmatprep.subr.bf16.mxu1 %v558_v0 }
  0x51   :  { %400 = vmatpush3.bf16.msra.mxu0 %v472_v3  ;;  %440 = vmatpush3.bf16.msra.mxu1 %v472_v3 }
  0x52   :  { %401 = vmatprep.subr.bf16.mxu0 %v558_v0  ;;  %441 = vmatprep.subr.bf16.mxu1 %v558_v0 }
  0x55   :  { %402 = vmatpush3.bf16.msra.mxu0 %v473_v4  ;;  %442 = vmatpush3.bf16.msra.mxu1 %v473_v4 }
  0x56   :  { %403 = vmatprep.subr.bf16.mxu0 %v558_v0  ;;  %443 = vmatprep.subr.bf16.mxu1 %v558_v0 }
  0x59   :  { %404 = vmatpush3.bf16.msra.mxu0 %v474_v7  ;;  %444 = vmatpush3.bf16.msra.mxu1 %v474_v7 }
  0x5a   :  { %405 = vmatprep.subr.bf16.mxu0 %v558_v0  ;;  %445 = vmatprep.subr.bf16.mxu1 %v558_v0 }
  0x5d   :  { %406 = vmatpush3.bf16.msra.mxu0 %v475_v10  ;;  %446 = vmatpush3.bf16.msra.mxu1 %v475_v10 }
  0x5e   :  { %407 = vmatprep.subr.bf16.mxu0 %v558_v0  ;;  %447 = vmatprep.subr.bf16.mxu1 %v558_v0 }
  0x61   :  { %408 = vmatpush3.bf16.msra.mxu0 %v476_v13  ;;  %448 = vmatpush3.bf16.msra.mxu1 %v476_v13 }
  0x62   :  { %409 = vmatprep.subr.bf16.mxu0 %v558_v0  ;;  %449 = vmatprep.subr.bf16.mxu1 %v558_v0 }
  0x65   :  { %410 = vmatpush3.bf16.msra.mxu0 %v477_v16  ;;  %450 = vmatpush3.bf16.msra.mxu1 %v477_v16 }
  0x68   :  { %412 = vmatmul.mubr.bf16.vlgmr.msra.gmra.mrb[0].mxu0 %v62_v8  ;;  %452 = vmatmul.mubr.bf16.vlgmr.msra.gmra.mrb[0].mxu1 %v195_v9 }
 0x13b   :  { %v188_v19 = vpop.f32.mrb[0].mxu0  ;;  %v273_v20 = vpop.f32.mrb[0].mxu1 }
 0x13c   :  { %v279_v21 = vmul.f32 0.03125, %v188_v19  ;;  %v413_v22 = vpop.f32.mrb[1].mxu0  ;;  %v453_v23 = vpop.f32.mrb[1].mxu1 }
 0x13d   :  { %v191_v24 = vpop.f32.mrb[2].mxu0  ;;  %v276_v25 = vpop.f32.mrb[2].mxu1 }
 0x13e   :  { %v280_v26 = vmul.f32 %v279_v21, %v188_v19  ;;  %v414_v27 = vpop.f32.mrb[3].mxu0  ;;  %v454_v28 = vpop.f32.mrb[3].mxu1  ;;  %v294_v40 = vsub.f32 %v627_v5, %v279_v21 }
 0x140   :  { %v281_v29 = vsub.f32 %v273_v20, %v280_v26 }
 0x142   :  { %v282_v30 = vmul.f32 0.032258064, %v281_v29 }
 0x144   :  { %v283_v31 = vmax.f32 %v282_v30, 0.0 }
 0x146   :  { %478 = vrsqrt.f32 %v283_v31  ;;  %vm286_vm1 = vcmp.eq.f32.partialorder %v283_v31, inf  ;;  %v289_v34 = vand.u32 2147483648, %v283_v31  ;;  %vm288_vm2 = vcmp.eq.f32.partialorder %v283_v31, 0.0 }
 0x150   :  { %v479_v32 = vpop.eup %478 }
 0x151   :  { %v285_v33 = vmul.f32 %v479_v32, %v283_v31 }
 0x153   :  { %v287_v35 = vsel %vm286_vm1, %v283_v31, %v285_v33 }
 0x154   :  { %v290_v36 = vsel %vm288_vm2, %v289_v34, %v287_v35 }
 0x155   :  { %v291_v37 = vadd.f32 1e-06, %v290_v36 }
 0x157   :  { %480 = vrcp.f32 %v291_v37 }
 0x161   :  { %v481_v39 = vpop.eup %480 }
 0x162   :  { %v302_v41 = vmul.f32 %v481_v39, %v337_v38 }
 0x164   :  { %v303_v43 = vmul.f32 %v302_v41, %v294_v40 }
 0x166   :  { %v311_v44 = vadd.f32 %v338_v42, %v303_v43 }
 0x168   :  { %312 = vst [vmem:[#allocation7] sm:$0xf] %v311_v44 }
 0x169   :  { %537 = shalt.err (!%p534_p6)
}
 0x16a   :  { %s538_s21 = scalar_lea.hbm %s687_s4, 64 }
 0x16b   :  { %p539_p7 = scmp.ne.s32.totalorder %s687_s4, %s538_s21  ;;  %p542_p8 = scmp.lt.u32.totalorder %s538_s21, %s687_s4 }
 0x16d   :  { %p544_p9 = pnand %p542_p8, %p539_p7 }
 0x16f   :  { %547 = shalt.err (!%p544_p9)
}
 0x170   :  { %322 = dma.vmem_to_hbm [thread:$0]  %s320_s18, 64, %s687_s4, [#allocation4]  }
 0x171   :  { %552 = dma.done.wait [#allocation4], 64  }
 0x172   :  { %553 = vsyncadd [#allocation4], 4294967232 }
 0x173   :  { %326 = vsyncpa [#allocation3], 1 }
 0x174   :  { %327 = vsyncpa [#allocation6], 1 }
 0x175   :  { %328 = vsyncpa [#allocation4], 1 }

</bundles_post_ra>
